<compile_context>
chip_gen: v6e
topology: v6e:2x2x1
jax: 0.10.0
libtpu: 0.0.40
codegen_flags: <defaults>
</compile_context>

<pallas_src>
import jax
import jax.numpy as jnp
from jax.experimental import pallas as pl
from jax.experimental.pallas import tpu as pltpu  # noqa: F401  (TPU backend)


def ensemble_role_kernel(w_ref, o_ref):
    # Identity matmul eliminated: eye(N) @ role_nets == role_nets, so the
    # forward reduces to a single whole-tile VMEM copy (1-2 vregs).
    o_ref[...] = w_ref[...]


def ensemble_role_forward(role_nets: jax.Array) -> jax.Array:
    """role_nets: [E, N, D] -> [E, N, D]  (== eye(N) @ role_nets[e]).

    NOTE: role_nets is donated to the output (input_output_aliases); the
    caller must not reuse the passed-in array afterward.
    """
    E, N, D = role_nets.shape
    nbytes = role_nets.size * role_nets.dtype.itemsize
    return pl.pallas_call(
        ensemble_role_kernel,
        out_shape=jax.ShapeDtypeStruct((E, N, D), role_nets.dtype),
        # No grid, no BlockSpecs: single invocation, full arrays in VMEM,
        # native layout (no wrapper reshapes / relayouts).
        input_output_aliases={0: 0},
        cost_estimate=pl.CostEstimate(
            flops=0, transcendentals=0, bytes_accessed=2 * nbytes
        ),
    )(role_nets)


if __name__ == "__main__":
    # Module defaults: ensemble_size=7, n_agents=8, role_dim=3, bias=False.
    E, N, D = 7, 8, 3

    # Deterministic parameter init (the reference's init_weights only touches
    # Linear/EnsembleFC, so role_nets is effectively uninitialized there; we
    # pick a deterministic small-normal init here).
    key = jax.random.PRNGKey(0)
    role_nets = 0.01 * jax.random.normal(key, (E, N, D), dtype=jnp.float32)

    # Compute the reference BEFORE the kernel call: role_nets is donated to
    # the kernel output and must not be touched afterward.
    ref = jnp.einsum("nm,emd->end", jnp.eye(N, dtype=jnp.float32), role_nets)
    ref = jax.block_until_ready(ref)

    out = jax.block_until_ready(ensemble_role_forward(role_nets))

    assert out.shape == (E, N, D)
    assert jnp.allclose(out, ref, atol=1e-6), "mismatch vs reference"

    print("KERNEL_OK")
</pallas_src>

<mosaic_0001>
module attributes {stable_mosaic.version = 11 : i64} {
  func.func @ensemble_role_kernel(%arg0: memref<7x8x3xf32, #tpu.memory_space<vmem>>, %arg1: memref<7x8x3xf32, #tpu.memory_space<vmem>>) attributes {dimension_semantics = [], scalar_prefetch = 0 : i64, scratch_operands = 0 : i64, tpu.core_type = #tpu.core_type<tc>} {
    %c0 = arith.constant 0 : index
    %c0_0 = arith.constant 0 : index
    %c0_1 = arith.constant 0 : index
    %0 = vector.load %arg0[%c0, %c0_0, %c0_1] : memref<7x8x3xf32, #tpu.memory_space<vmem>>, vector<7x8x3xf32>
    %c0_2 = arith.constant 0 : index
    %c0_3 = arith.constant 0 : index
    %c0_4 = arith.constant 0 : index
    %1 = vector.load %arg1[%c0_2, %c0_3, %c0_4] : memref<7x8x3xf32, #tpu.memory_space<vmem>>, vector<7x8x3xf32>
    tpu.vector_store %arg1[%c0_2, %c0_3, %c0_4], %0 {strides = array<i32>} : memref<7x8x3xf32, #tpu.memory_space<vmem>>, vector<7x8x3xf32>,
    return
  }
}

</mosaic_0001>

<bundles_post_ra>
// kernel: tpu_custom_call.1
= control target key start
LH: loop header
LB: loop body
LE: loop exit
PB: predicated region body
PF: predicated region fallthrough
CT: control target
= control target key end

     0   :  { %vm15_vm0 = vcmask 23552   ;;  %s79_s0 = inlined_call_operand.vmem [shape: f32[7,8,3], index: 0, kind: input, shape index: {}, may-alias: {0,1}]   ;;  %s80_s1 = inlined_call_operand.vmem [shape: f32[7,8,3], index: 1, kind: output, shape index: {}, may-alias: {0,1}]  }
   0x1   :  { %v8_v0 = vld [vmem:[%s79_s0] sm:$0xff]  ;;  %v9_v1 = vld [vmem:[%s79_s0 + $0x8] sm:$0xff]  ;;  %v10_v2 = vld [vmem:[%s79_s0 + $0x10] sm:$0xff] }
   0x2   :  { %16 = vst.msk [vmem:[%s80_s1] sm:$0xff] %vm15_vm0, %v8_v0  ;;  %17 = vst.msk [vmem:[%s80_s1 + $0x8] sm:$0xff] %vm15_vm0, %v9_v1 }
   0x3   :  { %18 = vst.msk [vmem:[%s80_s1 + $0x10] sm:$0xff] %vm15_vm0, %v10_v2 }
   0xa   :  { %v11_v3 = vld [vmem:[%s79_s0 + $0x18] sm:$0xff]  ;;  %v12_v4 = vld [vmem:[%s79_s0 + $0x20] sm:$0xff]  ;;  %v13_v5 = vld [vmem:[%s79_s0 + $0x28] sm:$0xff] }
   0xb   :  { %19 = vst.msk [vmem:[%s80_s1 + $0x18] sm:$0xff] %vm15_vm0, %v11_v3  ;;  %20 = vst.msk [vmem:[%s80_s1 + $0x20] sm:$0xff] %vm15_vm0, %v12_v4 }
   0xc   :  { %21 = vst.msk [vmem:[%s80_s1 + $0x28] sm:$0xff] %vm15_vm0, %v13_v5 }
  0x13   :  { %v14_v6 = vld [vmem:[%s79_s0 + $0x30] sm:$0xff] }
  0x14   :  { %22 = vst.msk [vmem:[%s80_s1 + $0x30] sm:$0xff] %vm15_vm0, %v14_v6 }

</bundles_post_ra>
